<compile_context>
chip_gen: v6e
topology: v6e:2x2x1
jax: 0.10.0
libtpu: 0.0.40
codegen_flags: <defaults>
</compile_context>

<pallas_src>
import jax
import jax.numpy as jnp
from jax import lax
from jax.experimental import pallas as pl
from jax.experimental.pallas import tpu as pltpu

EPS = 1e-5  # PyTorch BatchNorm2d default eps


# ------------------------------- Pallas kernel --------------------------------

def _make_fused_kernel(n_groups):
    """Fused (polyphase) deconv GEMM + training-mode BatchNorm + ReLU.

    refs layout:
      xs[g]   : (K_g, M)  bf16  -- tap slab of parity group g (taps folded into K)
      ws[g]   : (Cout, K_g) bf16
      gamma   : (Cout, 1) f32
      beta    : (Cout, 1) f32
      o_ref   : (Cout, n_groups * M) f32   -- lane-dense (M on the lane axis)
    """

    def kernel(*refs):
        xs = refs[:n_groups]
        ws = refs[n_groups:2 * n_groups]
        gamma_ref = refs[2 * n_groups]
        beta_ref = refs[2 * n_groups + 1]
        o_ref = refs[2 * n_groups + 2]

        # One MXU GEMM per parity group; bf16 inputs, f32 accumulation.
        ys = [jnp.dot(ws[g][...], xs[g][...], preferred_element_type=jnp.float32)
              for g in range(n_groups)]

        # Training-mode BatchNorm2d: per-channel batch mean / biased variance over
        # all N*Ho*Wo positions (lane axis), computed in f32.
        m_total = sum(int(y.shape[1]) for y in ys)
        inv_m = 1.0 / float(m_total)
        mean = sum(jnp.sum(y, axis=1, keepdims=True) for y in ys) * inv_m
        var = sum(jnp.sum(jnp.square(y - mean), axis=1, keepdims=True)
                  for y in ys) * inv_m
        scale = gamma_ref[...] * lax.rsqrt(var + EPS)      # (Cout, 1)
        shift = beta_ref[...] - mean * scale               # (Cout, 1)

        off = 0
        for y in ys:
            width = int(y.shape[1])
            o_ref[:, off:off + width] = jnp.maximum(y * scale + shift, 0.0)
            off += width

    return kernel


def _fused_call(x_slabs, w_slabs, gamma, beta):
    n_groups = len(x_slabs)
    cout = int(w_slabs[0].shape[0])
    m = int(x_slabs[0].shape[1])
    m_total = n_groups * m

    flops = sum(2 * int(w.shape[0]) * int(w.shape[1]) * m for w in w_slabs)
    flops += 6 * cout * m_total  # BN + ReLU epilogue
    bytes_accessed = (sum(int(a.size) * 2 for a in x_slabs)     # bf16 tap slabs
                      + sum(int(w.size) * 2 for w in w_slabs)   # bf16 weights
                      + 2 * cout * 4                            # gamma / beta
                      + cout * m_total * 4)                     # f32 output

    in_specs = [pl.BlockSpec(memory_space=pltpu.MemorySpace.VMEM)
                for _ in range(2 * n_groups + 2)]

    return pl.pallas_call(
        _make_fused_kernel(n_groups),
        out_shape=jax.ShapeDtypeStruct((cout, m_total), jnp.float32),
        in_specs=in_specs,
        out_specs=pl.BlockSpec(memory_space=pltpu.MemorySpace.VMEM),
        cost_estimate=pl.CostEstimate(flops=int(flops), transcendentals=0,
                                      bytes_accessed=int(bytes_accessed)),
    )(*x_slabs, *w_slabs,
      gamma.astype(jnp.float32).reshape(cout, 1),
      beta.astype(jnp.float32).reshape(cout, 1))


# --------------------------- JAX glue (layout plumbing) ------------------------

def _channel_first(x_nchw, spatial_pad):
    """(N,C,H,W) -> (C,N,Hp,Wp) with ((lo,hi),(lo,hi)) spatial zero padding."""
    (ylo, yhi), (xlo, xhi) = spatial_pad
    xp = jnp.pad(x_nchw, ((0, 0), (0, 0), (ylo, yhi), (xlo, xhi)))
    return jnp.transpose(xp, (1, 0, 2, 3))


def _tap_slab(x_cf, offsets, ho, wo):
    """x_cf: (C,N,Hp,Wp); offsets: [(oy,ox), ...] -> (len(offsets)*C, N*ho*wo)."""
    c, n = int(x_cf.shape[0]), int(x_cf.shape[1])
    views = [x_cf[:, :, oy:oy + ho, ox:ox + wo].reshape(c, n * ho * wo)
             for oy, ox in offsets]
    return views[0] if len(views) == 1 else jnp.concatenate(views, axis=0)


def _weight_slab(w_t, taps, k):
    """w_t: (Cin,Cout,k,k) PyTorch ConvTranspose2d weight.  Tap (dy,dx) of the
    equivalent regular conv uses the spatially flipped kernel w_t[..,k-1-dy,k-1-dx].
    Returns (Cout, len(taps)*Cin), tap-major on the K axis (matches _tap_slab)."""
    mats = [jnp.transpose(w_t[:, :, k - 1 - dy, k - 1 - dx]) for dy, dx in taps]
    return mats[0] if len(mats) == 1 else jnp.concatenate(mats, axis=1)


# Polyphase tap sets for k=3, stride=2, padding=1, output_padding=1.
# Output parity (r, c) row-major; entries are ((dy, dx), (input row/col offset)).
_POLY_GROUPS = (
    (((1, 1), (0, 0)),),
    (((1, 0), (0, 0)), ((1, 2), (0, 1))),
    (((0, 1), (0, 0)), ((2, 1), (1, 0))),
    (((0, 0), (0, 0)), ((0, 2), (0, 1)), ((2, 0), (1, 0)), ((2, 2), (1, 1))),
)


def deconv2d_bn_relu(x, w_t, gamma, beta, *, stride=1, padding=0, output_padding=0):
    """relu(batchnorm_train(conv_transpose2d(x, w_t, bias=False))).

    x: (N, Cin, H, W) f32, w_t: (Cin, Cout, k, k) PyTorch ConvTranspose2d weight.
    Returns (N, Cout, Ho, Wo) f32 (NCHW, matching PyTorch).
    """
    n, cin, h, w = (int(d) for d in x.shape)
    k = int(w_t.shape[2])
    cout = int(w_t.shape[1])

    if k == 3 and stride == 2 and padding == 1 and output_padding == 1:
        # Polyphase / subpixel path: 4 stride-1 GEMMs (one per output parity);
        # no zero-dilated input is ever built or multiplied.
        xc = _channel_first(x, ((0, 1), (0, 1)))
        x_slabs = [_tap_slab(xc, [off for _, off in g], h, w).astype(jnp.bfloat16)
                   for g in _POLY_GROUPS]
        w_slabs = [_weight_slab(w_t, [t for t, _ in g], k).astype(jnp.bfloat16)
                   for g in _POLY_GROUPS]
        y_t = _fused_call(x_slabs, w_slabs, gamma, beta)      # (Cout, 4*N*H*W)
        y_t = y_t.reshape(cout, 2, 2, n, h, w)                # (Cout, r, c, N, H, W)
        return jnp.transpose(y_t, (3, 0, 4, 1, 5, 2)).reshape(n, cout, 2 * h, 2 * w)

    # General fallback: zero-dilate by stride, pad, fold all k*k taps into K.
    lo = k - 1 - padding
    hi = k - 1 - padding + output_padding
    assert lo >= 0 and hi >= 0, "padding > kernel_size - 1 not supported"
    if stride > 1:
        hd, wd = (h - 1) * stride + 1, (w - 1) * stride + 1
        xd = jnp.zeros((n, cin, hd, wd), x.dtype).at[:, :, ::stride, ::stride].set(x)
    else:
        xd = x
    ho = (h - 1) * stride - 2 * padding + k + output_padding
    wo = (w - 1) * stride - 2 * padding + k + output_padding
    xc = _channel_first(xd, ((lo, hi), (lo, hi)))
    taps = [(dy, dx) for dy in range(k) for dx in range(k)]
    x_slab = _tap_slab(xc, taps, ho, wo).astype(jnp.bfloat16)   # (k*k*Cin, N*Ho*Wo)
    w_slab = _weight_slab(w_t, taps, k).astype(jnp.bfloat16)    # (Cout, k*k*Cin)
    y_t = _fused_call([x_slab], [w_slab], gamma, beta)          # (Cout, N*Ho*Wo)
    return jnp.transpose(y_t.reshape(cout, n, ho, wo), (1, 0, 2, 3))


# ------------------------------ pure-JAX reference -----------------------------

def reference_forward(x, w_t, gamma, beta, *, stride, padding, output_padding):
    k = int(w_t.shape[2])
    w_hwio = jnp.transpose(jnp.flip(w_t, axis=(2, 3)), (2, 3, 0, 1))
    lo = k - 1 - padding
    hi = k - 1 - padding + output_padding
    y = lax.conv_general_dilated(
        x, w_hwio, window_strides=(1, 1), padding=[(lo, hi), (lo, hi)],
        lhs_dilation=(stride, stride),
        dimension_numbers=("NCHW", "HWIO", "NCHW"),
        precision=lax.Precision.HIGHEST)
    mean = jnp.mean(y, axis=(0, 2, 3), keepdims=True)
    var = jnp.mean(jnp.square(y - mean), axis=(0, 2, 3), keepdims=True)
    y = (y - mean) * lax.rsqrt(var + EPS)
    y = y * gamma.reshape(1, -1, 1, 1) + beta.reshape(1, -1, 1, 1)
    return jnp.maximum(y, 0.0)


# ------------------------------------ main --------------------------------------

if __name__ == "__main__":
    key = jax.random.PRNGKey(0)
    kx, kw, kg, kb, kx2, kw2, kg2, kb2 = jax.random.split(key, 8)

    # Config 1 (canonical decoder block): ConvTranspose2d(32, 16, 3, stride=2,
    # padding=1, output_padding=1, bias=False) + BN + ReLU on (2, 32, 16, 16).
    n, cin, cout, h, w = 2, 32, 16, 16, 16
    x = jax.random.normal(kx, (n, cin, h, w), jnp.float32)
    bound = 1.0 / float(cin * 9) ** 0.5
    w_t = jax.random.uniform(kw, (cin, cout, 3, 3), jnp.float32, -bound, bound)
    gamma = jax.random.uniform(kg, (cout,), jnp.float32, 0.5, 1.5)
    beta = jax.random.uniform(kb, (cout,), jnp.float32, -0.1, 0.1)

    out = deconv2d_bn_relu(x, w_t, gamma, beta, stride=2, padding=1, output_padding=1)
    out = jax.block_until_ready(out)
    assert out.shape == (n, cout, 2 * h, 2 * w), out.shape
    assert bool(jnp.all(jnp.isfinite(out)))
    ref = reference_forward(x, w_t, gamma, beta, stride=2, padding=1, output_padding=1)
    diff = float(jnp.max(jnp.abs(out - ref)))
    assert diff < 5e-2, f"stride-2 mismatch vs reference: {diff}"

    # Config 2: stride-1 variant exercising the general tap-fold path.
    n2, cin2, cout2, h2, w2 = 2, 16, 32, 16, 16
    x2 = jax.random.normal(kx2, (n2, cin2, h2, w2), jnp.float32)
    bound2 = 1.0 / float(cin2 * 9) ** 0.5
    w_t2 = jax.random.uniform(kw2, (cin2, cout2, 3, 3), jnp.float32, -bound2, bound2)
    gamma2 = jax.random.uniform(kg2, (cout2,), jnp.float32, 0.5, 1.5)
    beta2 = jax.random.uniform(kb2, (cout2,), jnp.float32, -0.1, 0.1)

    out2 = deconv2d_bn_relu(x2, w_t2, gamma2, beta2, stride=1, padding=1, output_padding=0)
    out2 = jax.block_until_ready(out2)
    assert out2.shape == (n2, cout2, h2, w2), out2.shape
    assert bool(jnp.all(jnp.isfinite(out2)))
    ref2 = reference_forward(x2, w_t2, gamma2, beta2, stride=1, padding=1, output_padding=0)
    diff2 = float(jnp.max(jnp.abs(out2 - ref2)))
    assert diff2 < 5e-2, f"stride-1 mismatch vs reference: {diff2}"

    print("KERNEL_OK")
</pallas_src>

<mosaic_0001>
module attributes {stable_mosaic.version = 11 : i64} {
  func.func @kernel(%arg0: memref<32x512xbf16, #tpu.memory_space<vmem>>, %arg1: memref<64x512xbf16, #tpu.memory_space<vmem>>, %arg2: memref<64x512xbf16, #tpu.memory_space<vmem>>, %arg3: memref<128x512xbf16, #tpu.memory_space<vmem>>, %arg4: memref<16x32xbf16, #tpu.memory_space<vmem>>, %arg5: memref<16x64xbf16, #tpu.memory_space<vmem>>, %arg6: memref<16x64xbf16, #tpu.memory_space<vmem>>, %arg7: memref<16x128xbf16, #tpu.memory_space<vmem>>, %arg8: memref<16x1xf32, #tpu.memory_space<vmem>>, %arg9: memref<16x1xf32, #tpu.memory_space<vmem>>, %arg10: memref<16x2048xf32, #tpu.memory_space<vmem>>) attributes {dimension_semantics = [], scalar_prefetch = 0 : i64, scratch_operands = 0 : i64, tpu.core_type = #tpu.core_type<tc>} {
    %c0 = arith.constant 0 : index
    %c0_0 = arith.constant 0 : index
    %0 = vector.load %arg4[%c0, %c0_0] : memref<16x32xbf16, #tpu.memory_space<vmem>>, vector<16x32xbf16>
    %c0_1 = arith.constant 0 : index
    %c0_2 = arith.constant 0 : index
    %1 = vector.load %arg0[%c0_1, %c0_2] : memref<32x512xbf16, #tpu.memory_space<vmem>>, vector<32x512xbf16>
    %cst = arith.constant dense<0.000000e+00> : vector<16x512xf32>
    %2 = tpu.matmul %0, %1, %cst {dimension_numbers = #tpu.dot_dimension_numbers<[1], [0], [0], [1], [0, 0, 1, 1], [], []>} : vector<16x32xbf16>, vector<32x512xbf16>, vector<16x512xf32> -> vector<16x512xf32>
    %c0_3 = arith.constant 0 : index
    %c0_4 = arith.constant 0 : index
    %3 = vector.load %arg5[%c0_3, %c0_4] : memref<16x64xbf16, #tpu.memory_space<vmem>>, vector<16x64xbf16>
    %c0_5 = arith.constant 0 : index
    %c0_6 = arith.constant 0 : index
    %4 = vector.load %arg1[%c0_5, %c0_6] : memref<64x512xbf16, #tpu.memory_space<vmem>>, vector<64x512xbf16>
    %cst_7 = arith.constant dense<0.000000e+00> : vector<16x512xf32>
    %5 = tpu.matmul %3, %4, %cst_7 {dimension_numbers = #tpu.dot_dimension_numbers<[1], [0], [0], [1], [0, 0, 1, 1], [], []>} : vector<16x64xbf16>, vector<64x512xbf16>, vector<16x512xf32> -> vector<16x512xf32>
    %c0_8 = arith.constant 0 : index
    %c0_9 = arith.constant 0 : index
    %6 = vector.load %arg6[%c0_8, %c0_9] : memref<16x64xbf16, #tpu.memory_space<vmem>>, vector<16x64xbf16>
    %c0_10 = arith.constant 0 : index
    %c0_11 = arith.constant 0 : index
    %7 = vector.load %arg2[%c0_10, %c0_11] : memref<64x512xbf16, #tpu.memory_space<vmem>>, vector<64x512xbf16>
    %cst_12 = arith.constant dense<0.000000e+00> : vector<16x512xf32>
    %8 = tpu.matmul %6, %7, %cst_12 {dimension_numbers = #tpu.dot_dimension_numbers<[1], [0], [0], [1], [0, 0, 1, 1], [], []>} : vector<16x64xbf16>, vector<64x512xbf16>, vector<16x512xf32> -> vector<16x512xf32>
    %c0_13 = arith.constant 0 : index
    %c0_14 = arith.constant 0 : index
    %9 = vector.load %arg7[%c0_13, %c0_14] : memref<16x128xbf16, #tpu.memory_space<vmem>>, vector<16x128xbf16>
    %c0_15 = arith.constant 0 : index
    %c0_16 = arith.constant 0 : index
    %10 = vector.load %arg3[%c0_15, %c0_16] : memref<128x512xbf16, #tpu.memory_space<vmem>>, vector<128x512xbf16>
    %cst_17 = arith.constant dense<0.000000e+00> : vector<16x512xf32>
    %11 = tpu.matmul %9, %10, %cst_17 {dimension_numbers = #tpu.dot_dimension_numbers<[1], [0], [0], [1], [0, 0, 1, 1], [], []>} : vector<16x128xbf16>, vector<128x512xbf16>, vector<16x512xf32> -> vector<16x512xf32>
    %cst_18 = arith.constant dense<0.000000e+00> : vector<16xf32>
    %12 = vector.multi_reduction <add>, %2, %cst_18 [1] : vector<16x512xf32> to vector<16xf32>
    %13 = vector.shape_cast %12 : vector<16xf32> to vector<16x1xf32>
    %cst_19 = arith.constant 0.000000e+00 : f32
    %14 = vector.broadcast %cst_19 : f32 to vector<16x1xf32>
    %15 = arith.addf %14, %13 : vector<16x1xf32>
    %cst_20 = arith.constant dense<0.000000e+00> : vector<16xf32>
    %16 = vector.multi_reduction <add>, %5, %cst_20 [1] : vector<16x512xf32> to vector<16xf32>
    %17 = vector.shape_cast %16 : vector<16xf32> to vector<16x1xf32>
    %18 = arith.addf %15, %17 : vector<16x1xf32>
    %cst_21 = arith.constant dense<0.000000e+00> : vector<16xf32>
    %19 = vector.multi_reduction <add>, %8, %cst_21 [1] : vector<16x512xf32> to vector<16xf32>
    %20 = vector.shape_cast %19 : vector<16xf32> to vector<16x1xf32>
    %21 = arith.addf %18, %20 : vector<16x1xf32>
    %cst_22 = arith.constant dense<0.000000e+00> : vector<16xf32>
    %22 = vector.multi_reduction <add>, %11, %cst_22 [1] : vector<16x512xf32> to vector<16xf32>
    %23 = vector.shape_cast %22 : vector<16xf32> to vector<16x1xf32>
    %24 = arith.addf %21, %23 : vector<16x1xf32>
    %cst_23 = arith.constant 4.8828125E-4 : f32
    %25 = vector.broadcast %cst_23 : f32 to vector<16x1xf32>
    %26 = arith.mulf %24, %25 : vector<16x1xf32>
    %27 = vector.broadcast %26 : vector<16x1xf32> to vector<16x512xf32>
    %28 = arith.subf %2, %27 : vector<16x512xf32>
    %29 = arith.mulf %28, %28 : vector<16x512xf32>
    %cst_24 = arith.constant dense<0.000000e+00> : vector<16xf32>
    %30 = vector.multi_reduction <add>, %29, %cst_24 [1] : vector<16x512xf32> to vector<16xf32>
    %31 = vector.shape_cast %30 : vector<16xf32> to vector<16x1xf32>
    %cst_25 = arith.constant 0.000000e+00 : f32
    %32 = vector.broadcast %cst_25 : f32 to vector<16x1xf32>
    %33 = arith.addf %32, %31 : vector<16x1xf32>
    %34 = vector.broadcast %26 : vector<16x1xf32> to vector<16x512xf32>
    %35 = arith.subf %5, %34 : vector<16x512xf32>
    %36 = arith.mulf %35, %35 : vector<16x512xf32>
    %cst_26 = arith.constant dense<0.000000e+00> : vector<16xf32>
    %37 = vector.multi_reduction <add>, %36, %cst_26 [1] : vector<16x512xf32> to vector<16xf32>
    %38 = vector.shape_cast %37 : vector<16xf32> to vector<16x1xf32>
    %39 = arith.addf %33, %38 : vector<16x1xf32>
    %40 = vector.broadcast %26 : vector<16x1xf32> to vector<16x512xf32>
    %41 = arith.subf %8, %40 : vector<16x512xf32>
    %42 = arith.mulf %41, %41 : vector<16x512xf32>
    %cst_27 = arith.constant dense<0.000000e+00> : vector<16xf32>
    %43 = vector.multi_reduction <add>, %42, %cst_27 [1] : vector<16x512xf32> to vector<16xf32>
    %44 = vector.shape_cast %43 : vector<16xf32> to vector<16x1xf32>
    %45 = arith.addf %39, %44 : vector<16x1xf32>
    %46 = vector.broadcast %26 : vector<16x1xf32> to vector<16x512xf32>
    %47 = arith.subf %11, %46 : vector<16x512xf32>
    %48 = arith.mulf %47, %47 : vector<16x512xf32>
    %cst_28 = arith.constant dense<0.000000e+00> : vector<16xf32>
    %49 = vector.multi_reduction <add>, %48, %cst_28 [1] : vector<16x512xf32> to vector<16xf32>
    %50 = vector.shape_cast %49 : vector<16xf32> to vector<16x1xf32>
    %51 = arith.addf %45, %50 : vector<16x1xf32>
    %cst_29 = arith.constant 4.8828125E-4 : f32
    %52 = vector.broadcast %cst_29 : f32 to vector<16x1xf32>
    %53 = arith.mulf %51, %52 : vector<16x1xf32>
    %c0_30 = arith.constant 0 : index
    %c0_31 = arith.constant 0 : index
    %54 = vector.load %arg8[%c0_30, %c0_31] : memref<16x1xf32, #tpu.memory_space<vmem>>, vector<16x1xf32>
    %cst_32 = arith.constant 9.99999974E-6 : f32
    %55 = vector.broadcast %cst_32 : f32 to vector<16x1xf32>
    %56 = arith.addf %53, %55 : vector<16x1xf32>
    %57 = math.rsqrt %56 : vector<16x1xf32>
    %58 = arith.mulf %54, %57 : vector<16x1xf32>
    %c0_33 = arith.constant 0 : index
    %c0_34 = arith.constant 0 : index
    %59 = vector.load %arg9[%c0_33, %c0_34] : memref<16x1xf32, #tpu.memory_space<vmem>>, vector<16x1xf32>
    %60 = arith.mulf %26, %58 : vector<16x1xf32>
    %61 = arith.subf %59, %60 : vector<16x1xf32>
    %62 = vector.broadcast %58 : vector<16x1xf32> to vector<16x512xf32>
    %63 = arith.mulf %2, %62 : vector<16x512xf32>
    %64 = vector.broadcast %61 : vector<16x1xf32> to vector<16x512xf32>
    %65 = arith.addf %63, %64 : vector<16x512xf32>
    %cst_35 = arith.constant 0.000000e+00 : f32
    %66 = vector.broadcast %cst_35 : f32 to vector<16x512xf32>
    %67 = arith.maximumf %65, %66 : vector<16x512xf32>
    %c0_36 = arith.constant 0 : index
    %c0_37 = arith.constant 0 : index
    %68 = vector.load %arg10[%c0_36, %c0_37] : memref<16x2048xf32, #tpu.memory_space<vmem>>, vector<16x512xf32>
    tpu.vector_store %arg10[%c0_36, %c0_37], %67 {strides = array<i32>} : memref<16x2048xf32, #tpu.memory_space<vmem>>, vector<16x512xf32>,
    %69 = vector.broadcast %58 : vector<16x1xf32> to vector<16x512xf32>
    %70 = arith.mulf %5, %69 : vector<16x512xf32>
    %71 = vector.broadcast %61 : vector<16x1xf32> to vector<16x512xf32>
    %72 = arith.addf %70, %71 : vector<16x512xf32>
    %cst_38 = arith.constant 0.000000e+00 : f32
    %73 = vector.broadcast %cst_38 : f32 to vector<16x512xf32>
    %74 = arith.maximumf %72, %73 : vector<16x512xf32>
    %c0_39 = arith.constant 0 : index
    %c512 = arith.constant 512 : index
    %75 = vector.load %arg10[%c0_39, %c512] : memref<16x2048xf32, #tpu.memory_space<vmem>>, vector<16x512xf32>
    tpu.vector_store %arg10[%c0_39, %c512], %74 {strides = array<i32>} : memref<16x2048xf32, #tpu.memory_space<vmem>>, vector<16x512xf32>,
    %76 = vector.broadcast %58 : vector<16x1xf32> to vector<16x512xf32>
    %77 = arith.mulf %8, %76 : vector<16x512xf32>
    %78 = vector.broadcast %61 : vector<16x1xf32> to vector<16x512xf32>
    %79 = arith.addf %77, %78 : vector<16x512xf32>
    %cst_40 = arith.constant 0.000000e+00 : f32
    %80 = vector.broadcast %cst_40 : f32 to vector<16x512xf32>
    %81 = arith.maximumf %79, %80 : vector<16x512xf32>
    %c0_41 = arith.constant 0 : index
    %c1024 = arith.constant 1024 : index
    %82 = vector.load %arg10[%c0_41, %c1024] : memref<16x2048xf32, #tpu.memory_space<vmem>>, vector<16x512xf32>
    tpu.vector_store %arg10[%c0_41, %c1024], %81 {strides = array<i32>} : memref<16x2048xf32, #tpu.memory_space<vmem>>, vector<16x512xf32>,
    %83 = vector.broadcast %58 : vector<16x1xf32> to vector<16x512xf32>
    %84 = arith.mulf %11, %83 : vector<16x512xf32>
    %85 = vector.broadcast %61 : vector<16x1xf32> to vector<16x512xf32>
    %86 = arith.addf %84, %85 : vector<16x512xf32>
    %cst_42 = arith.constant 0.000000e+00 : f32
    %87 = vector.broadcast %cst_42 : f32 to vector<16x512xf32>
    %88 = arith.maximumf %86, %87 : vector<16x512xf32>
    %c0_43 = arith.constant 0 : index
    %c1536 = arith.constant 1536 : index
    %89 = vector.load %arg10[%c0_43, %c1536] : memref<16x2048xf32, #tpu.memory_space<vmem>>, vector<16x512xf32>
    tpu.vector_store %arg10[%c0_43, %c1536], %88 {strides = array<i32>} : memref<16x2048xf32, #tpu.memory_space<vmem>>, vector<16x512xf32>,
    return
  }
}

</mosaic_0001>

<bundles_post_ra>
// kernel: tpu_custom_call.1
= control target key start
LH: loop header
LB: loop body
LE: loop exit
PB: predicated region body
PF: predicated region fallthrough
CT: control target
= control target key end

     0   :  { %15 = vsyncpa [#allocation3], 0  ;;  %s1935_s0 = inlined_call_operand.hbm [shape: bf16[32,512], index: 0, kind: input, shape index: {}]   ;;  %s1936_s1 = inlined_call_operand.hbm [shape: bf16[64,512], index: 1, kind: input, shape index: {}]   ;;  %s1937_s2 = inlined_call_operand.hbm [shape: bf16[64,512], index: 2, kind: input, shape index: {}]   ;;  %s1938_s3 = inlined_call_operand.hbm [shape: bf16[128,512], index: 3, kind: input, shape index: {}]   ;;  %s1939_s4 = inlined_call_operand.vmem [shape: bf16[16,32], index: 4, kind: input, shape index: {}]   ;;  %s1940_s5 = inlined_call_operand.vmem [shape: bf16[16,64], index: 5, kind: input, shape index: {}]   ;;  %s1941_s6 = inlined_call_operand.vmem [shape: bf16[16,64], index: 6, kind: input, shape index: {}]   ;;  %s1942_s7 = inlined_call_operand.vmem [shape: bf16[16,128], index: 7, kind: input, shape index: {}]   ;;  %s1943_s8 = inlined_call_operand.vmem [shape: f32[16,1], index: 8, kind: input, shape index: {}]   ;;  %s1944_s9 = inlined_call_operand.vmem [shape: f32[16,1], index: 9, kind: input, shape index: {}]   ;;  %s1945_s10 = inlined_call_operand.hbm [shape: f32[16,2048], index: 10, kind: output, shape index: {}]  }
   0x1   :  { %16 = vsyncpa [#allocation6], 0 }
   0x2   :  { %17 = vsyncpa [#allocation9], 0 }
   0x3   :  { %18 = vsyncpa [#allocation4], 0  ;;  %s1571_s13 = smov [#allocation5]   ;;  %s1572_s15 = smov [#allocation2]  }
   0x4   :  { %s36_s14 = sshll.u32 %s1571_s13, 4  ;;  %s24_s16 = sshll.u32 %s1572_s15, 4  ;;  %s37_s14 = int_to_ptr.vmem [resolvable:$true] %s36_s14  ;;  %s25_s16 = int_to_ptr.vmem [resolvable:$true] %s24_s16 }
   0x5   :  { %s1471_s17 = scalar_lea.vmem %s37_s14, 2048  ;;  %p1476_p1 = scmp.lt.s32.totalorder %s37_s14, %s37_s14 }
   0x6   :  { %p1472_p0 = scmp.ne.s32.totalorder %s37_s14, %s1471_s17  ;;  %p1477_p2 = scmp.lt.s32.totalorder %s1471_s17, %s1471_s17 }
   0x8   :  { %p1478_p3 = por %p1477_p2, %p1476_p1 }
   0xa   :  { %p1479_p4 = pnand %p1478_p3, %p1472_p0 }
   0xc   :  { %1482 = shalt.err (!%p1479_p4)
}
   0xd   :  { %s1573_s18 = smov 256   ;;  %s1574_s19 = smov 16  }
   0xe   :  { %42 = dma.hbm_to_vmem [thread:$0]  %s1936_s1, 2048, %s37_s14, [#allocation6], %s1573_s18, %s1573_s18, %s1574_s19  }
   0xf   :  { %s1491_s22 = scalar_lea.vmem %s25_s16, 1024  ;;  %p1496_p6 = scmp.lt.s32.totalorder %s25_s16, %s25_s16 }
  0x10   :  { %p1492_p5 = scmp.ne.s32.totalorder %s25_s16, %s1491_s22  ;;  %p1497_p7 = scmp.lt.s32.totalorder %s1491_s22, %s1491_s22 }
  0x12   :  { %p1498_p8 = por %p1497_p7, %p1496_p6 }
  0x14   :  { %p1499_p9 = pnand %p1498_p8, %p1492_p5 }
  0x16   :  { %1502 = shalt.err (!%p1499_p9)
}
  0x17   :  { %30 = dma.hbm_to_vmem [thread:$0]  %s1935_s0, 1024, %s25_s16, [#allocation3], %s1573_s18, %s1573_s18, %s1574_s19  }
  0x18   :  { %s1575_s25 = smov [#allocation7]   ;;  %s1576_s27 = smov [#allocation8]  }
  0x19   :  { %s48_s26 = sshll.u32 %s1575_s25, 4  ;;  %s60_s28 = sshll.u32 %s1576_s27, 4  ;;  %s49_s26 = int_to_ptr.vmem [resolvable:$true] %s48_s26  ;;  %s61_s28 = int_to_ptr.vmem [resolvable:$true] %s60_s28 }
  0x1a   :  { %s1511_s1 = scalar_lea.vmem %s49_s26, 2048  ;;  %p1516_p11 = scmp.lt.s32.totalorder %s49_s26, %s49_s26 }
  0x1b   :  { %p1512_p10 = scmp.ne.s32.totalorder %s49_s26, %s1511_s1  ;;  %p1517_p12 = scmp.lt.s32.totalorder %s1511_s1, %s1511_s1 }
  0x1d   :  { %p1518_p13 = por %p1517_p12, %p1516_p11 }
  0x1f   :  { %p1519_p0 = pnand %p1518_p13, %p1512_p10 }
  0x21   :  { %1522 = shalt.err (!%p1519_p0)
}
  0x22   :  { %54 = dma.hbm_to_vmem [thread:$0]  %s1937_s2, 2048, %s49_s26, [#allocation6], %s1573_s18, %s1573_s18, %s1574_s19  }
  0x23   :  { %s1531_s0 = scalar_lea.vmem %s61_s28, 4096  ;;  %p1536_p2 = scmp.lt.s32.totalorder %s61_s28, %s61_s28 }
  0x24   :  { %p1532_p1 = scmp.ne.s32.totalorder %s61_s28, %s1531_s0  ;;  %p1537_p3 = scmp.lt.s32.totalorder %s1531_s0, %s1531_s0 }
  0x26   :  { %p1538_p4 = por %p1537_p3, %p1536_p2 }
  0x28   :  { %p1539_p5 = pnand %p1538_p4, %p1532_p1 }
  0x2a   :  { %1542 = shalt.err (!%p1539_p5)
}
  0x2b   :  { %66 = dma.hbm_to_vmem [thread:$0]  %s1938_s3, 4096, %s61_s28, [#allocation9], %s1573_s18, %s1573_s18, %s1574_s19  }
  0x2c   :  { %1563 = dma.done.wait [#allocation3], 1024  }
  0x2d   :  { %1564 = vsyncadd [#allocation3], 4294966272 }
  0x2e   :  { %1565 = dma.done.wait [#allocation6], 4096  }
  0x2f   :  { %1566 = vsyncadd [#allocation6], 4294963200 }
  0x30   :  { %1567 = dma.done.wait [#allocation9], 4096  }
  0x31   :  { %1568 = vsyncadd [#allocation9], 4294963200  ;;  %v1577_v0 = vmov 0   ;;  %v1347_v1 = vld [vmem:[#allocation2 + $0x24] ss:$16 sps:$4 sm:$0xff]   ;;  %vm147_vm0 = vcmask 261120  }
  0x32   :  { %183 = vmatprep.mubr.bf16.mxu0 %v1577_v0  ;;  %226 = vmatprep.mubr.bf16.mxu1 %v1577_v0  ;;  %v1349_v2 = vld [vmem:[#allocation2 + $0x2c] ss:$16 sps:$4 sm:$0xff]   ;;  %v1351_v3 = vld [vmem:[#allocation2 + $0x20] ss:$16 sps:$4 sm:$0xff]   ;;  %v1352_v4 = vld [vmem:[#allocation2 + $0x28] ss:$16 sps:$4 sm:$0xff]  }
  0x33   :  { %1345 = vset.pattern.permute.xlu0 %v1577_v0  ;;  %1346 = vset.pattern.permute.xlu1 %v1577_v0  ;;  %v1353_v5 = vld [vmem:[#allocation2 + $0x4] ss:$16 sps:$4 sm:$0xff]   ;;  %v1355_v6 = vld [vmem:[#allocation2 + $0xc] ss:$16 sps:$4 sm:$0xff]   ;;  %v1357_v7 = vld [vmem:[#allocation2] ss:$16 sps:$4 sm:$0xff]  }
  0x34   :  { %163 = vmatprep.subr.bf16.mxu0 %v1347_v1  ;;  %206 = vmatprep.subr.bf16.mxu1 %v1349_v2  ;;  %v1358_v8 = vld [vmem:[#allocation2 + $0x8] ss:$16 sps:$4 sm:$0xff]   ;;  %v1359_v9 = vld [vmem:[%s1939_s4] sm:$0xff]   ;;  %v1365_v13 = vld [vmem:[#allocation5 + $0x6c] ss:$16 sps:$4 sm:$0xff]   ;;  %vm340_vm1 = vcmask 523264  }
  0x35   :  { %164 = vmatpush1.bf16.msra.mxu0 %v1351_v3  ;;  %207 = vmatpush1.bf16.msra.mxu1 %v1352_v4  ;;  %v1360_v10 = vld [vmem:[#allocation5 + $0x60] ss:$16 sps:$4 sm:$0xff]   ;;  %v1362_v11 = vld [vmem:[#allocation5 + $0x64] ss:$16 sps:$4 sm:$0xff]   ;;  %v1363_v12 = vld [vmem:[#allocation5 + $0x68] ss:$16 sps:$4 sm:$0xff]  }
  0x36   :  { %165 = vmatprep.subr.bf16.mxu0 %v1353_v5  ;;  %208 = vmatprep.subr.bf16.mxu1 %v1355_v6  ;;  %v1368_v14 = vld [vmem:[#allocation5 + $0x44] ss:$16 sps:$4 sm:$0xff]   ;;  %v1371_v15 = vld [vmem:[#allocation5 + $0x4c] ss:$16 sps:$4 sm:$0xff]   ;;  %v1366_v16 = vld [vmem:[#allocation5 + $0x40] ss:$16 sps:$4 sm:$0xff]  }
  0x37   :  { %v1369_v17 = vld [vmem:[#allocation5 + $0x48] ss:$16 sps:$4 sm:$0xff]   ;;  %v1374_v18 = vld [vmem:[#allocation5 + $0x24] ss:$16 sps:$4 sm:$0xff]   ;;  %v1377_v19 = vld [vmem:[#allocation5 + $0x2c] ss:$16 sps:$4 sm:$0xff]  }
  0x38   :  { %v1372_v20 = vld [vmem:[#allocation5 + $0x20] ss:$16 sps:$4 sm:$0xff]   ;;  %v1375_v21 = vld [vmem:[#allocation5 + $0x28] ss:$16 sps:$4 sm:$0xff]   ;;  %v1380_v22 = vld [vmem:[#allocation5 + $0x4] ss:$16 sps:$4 sm:$0xff]  }
  0x39   :  { %166 = vmatpush1.bf16.msra.mxu0 %v1357_v7  ;;  %209 = vmatpush1.bf16.msra.mxu1 %v1358_v8  ;;  %v1383_v23 = vld [vmem:[#allocation5 + $0xc] ss:$16 sps:$4 sm:$0xff]   ;;  %v1378_v24 = vld [vmem:[#allocation5] ss:$16 sps:$4 sm:$0xff]   ;;  %v1381_v25 = vld [vmem:[#allocation5 + $0x8] ss:$16 sps:$4 sm:$0xff]  }
  0x3a   :  { %352 = vmatprep.subr.bf16.mxu0 %v1362_v11  ;;  %395 = vmatprep.subr.bf16.mxu1 %v1365_v13  ;;  %v1387_v26 = vld [vmem:[#allocation7 + $0x64] ss:$16 sps:$4 sm:$0xff]   ;;  %v1390_v27 = vld [vmem:[#allocation7 + $0x6c] ss:$16 sps:$4 sm:$0xff]   ;;  %v1385_v29 = vld [vmem:[#allocation7 + $0x60] ss:$16 sps:$4 sm:$0xff]  }
  0x3b   :  { %v1384_v28 = vld [vmem:[%s1940_s5] sm:$0xff]   ;;  %v1388_v30 = vld [vmem:[#allocation7 + $0x68] ss:$16 sps:$4 sm:$0xff]   ;;  %v1396_v32 = vld [vmem:[#allocation7 + $0x4c] ss:$16 sps:$4 sm:$0xff]  }
  0x3c   :  { %1262 = vmatmul.mubr.msk.bf16.vlgmr.msra.gmra.mxu0 %vm147_vm0, %v1359_v9  ;;  %1263 = vmatmul.mubr.msk.bf16.vlgmr.msra.gmra.mxu1 %vm147_vm0, %v1359_v9  ;;  %v1393_v31 = vld [vmem:[#allocation7 + $0x44] ss:$16 sps:$4 sm:$0xff]   ;;  %v1391_v33 = vld [vmem:[#allocation7 + $0x40] ss:$16 sps:$4 sm:$0xff]   ;;  %v1394_v34 = vld [vmem:[#allocation7 + $0x48] ss:$16 sps:$4 sm:$0xff]  }
  0x3d   :  { %353 = vmatpush1.bf16.msra.mxu0 %v1360_v10  ;;  %396 = vmatpush1.bf16.msra.mxu1 %v1363_v12  ;;  %v1399_v35 = vld [vmem:[#allocation7 + $0x24] ss:$16 sps:$4 sm:$0xff]   ;;  %v1402_v36 = vld [vmem:[#allocation7 + $0x2c] ss:$16 sps:$4 sm:$0xff]   ;;  %v1397_v37 = vld [vmem:[#allocation7 + $0x20] ss:$16 sps:$4 sm:$0xff]  }
  0x3e   :  { %354 = vmatprep.subr.bf16.mxu0 %v1368_v14  ;;  %397 = vmatprep.subr.bf16.mxu1 %v1371_v15  ;;  %v1400_v38 = vld [vmem:[#allocation7 + $0x28] ss:$16 sps:$4 sm:$0xff]   ;;  %v1405_v39 = vld [vmem:[#allocation7 + $0x4] ss:$16 sps:$4 sm:$0xff]   ;;  %v1408_v40 = vld [vmem:[#allocation7 + $0xc] ss:$16 sps:$4 sm:$0xff]  }
  0x3f   :  { %376 = vmatprep.mubr.bf16.mxu0 %v1577_v0  ;;  %419 = vmatprep.mubr.bf16.mxu1 %v1577_v0  ;;  %v1403_v41 = vld [vmem:[#allocation7] ss:$16 sps:$4 sm:$0xff]   ;;  %v1406_v42 = vld [vmem:[#allocation7 + $0x8] ss:$16 sps:$4 sm:$0xff]   ;;  %v1412_v43 = vld [vmem:[#allocation8 + $0xe4] ss:$16 sps:$4 sm:$0xff]  }
  0x40   :  { %v1415_v44 = vld [vmem:[#allocation8 + $0xec] ss:$16 sps:$4 sm:$0xff]   ;;  %v1409_v45 = vld [vmem:[%s1941_s6] sm:$0xff]   ;;  %v1413_v47 = vld [vmem:[#allocation8 + $0xe8] ss:$16 sps:$4 sm:$0xff]  }
  0x41   :  { %355 = vmatpush1.bf16.msra.mxu0 %v1366_v16  ;;  %398 = vmatpush1.bf16.msra.mxu1 %v1369_v17  ;;  %v1410_v46 = vld [vmem:[#allocation8 + $0xe0] ss:$16 sps:$4 sm:$0xff]   ;;  %v1418_v48 = vld [vmem:[#allocation8 + $0xc4] ss:$16 sps:$4 sm:$0xff]   ;;  %v1421_v49 = vld [vmem:[#allocation8 + $0xcc] ss:$16 sps:$4 sm:$0xff]  }
  0x42   :  { %356 = vmatprep.subr.bf16.mxu0 %v1374_v18  ;;  %399 = vmatprep.subr.bf16.mxu1 %v1377_v19  ;;  %v1416_v50 = vld [vmem:[#allocation8 + $0xc0] ss:$16 sps:$4 sm:$0xff]   ;;  %v1419_v51 = vld [vmem:[#allocation8 + $0xc8] ss:$16 sps:$4 sm:$0xff]   ;;  %v1424_v52 = vld [vmem:[#allocation8 + $0xa4] ss:$16 sps:$4 sm:$0xff]  }
  0x43   :  { %v1427_v53 = vld [vmem:[#allocation8 + $0xac] ss:$16 sps:$4 sm:$0xff]   ;;  %v1422_v54 = vld [vmem:[#allocation8 + $0xa0] ss:$16 sps:$4 sm:$0xff]   ;;  %v1425_v55 = vld [vmem:[#allocation8 + $0xa8] ss:$16 sps:$4 sm:$0xff]  }
  0x44   :  { %v1430_v56 = vld [vmem:[#allocation8 + $0x84] ss:$16 sps:$4 sm:$0xff]   ;;  %v1433_v57 = vld [vmem:[#allocation8 + $0x8c] ss:$16 sps:$4 sm:$0xff]   ;;  %v1428_v58 = vld [vmem:[#allocation8 + $0x80] ss:$16 sps:$4 sm:$0xff]  }
  0x45   :  { %357 = vmatpush1.bf16.msra.mxu0 %v1372_v20  ;;  %400 = vmatpush1.bf16.msra.mxu1 %v1375_v21  ;;  %v1431_v59 = vld [vmem:[#allocation8 + $0x88] ss:$16 sps:$4 sm:$0xff]   ;;  %v1436_v60 = vld [vmem:[#allocation8 + $0x64] ss:$16 sps:$4 sm:$0xff]   ;;  %v1439_v61 = vld [vmem:[#allocation8 + $0x6c] ss:$16 sps:$4 sm:$0xff]  }
  0x46   :  { %358 = vmatprep.subr.bf16.mxu0 %v1380_v22  ;;  %401 = vmatprep.subr.bf16.mxu1 %v1383_v23  ;;  %v1434_v62 = vld [vmem:[#allocation8 + $0x60] ss:$16 sps:$4 sm:$0xff]   ;;  %v1437_v63 = vld [vmem:[#allocation8 + $0x68] ss:$16 sps:$4 sm:$0xff]   ;;  %v1445_v1 = vld [vmem:[#allocation8 + $0x4c] ss:$16 sps:$4 sm:$0xff]  }
  0x47   :  { %v1440_v2 = vld [vmem:[#allocation8 + $0x40] ss:$16 sps:$4 sm:$0xff]   ;;  %v1443_v3 = vld [vmem:[#allocation8 + $0x48] ss:$16 sps:$4 sm:$0xff]   ;;  %v1448_v4 = vld [vmem:[#allocation8 + $0x24] ss:$16 sps:$4 sm:$0xff]  }
  0x48   :  { %v1451_v5 = vld [vmem:[#allocation8 + $0x2c] ss:$16 sps:$4 sm:$0xff]   ;;  %v1446_v6 = vld [vmem:[#allocation8 + $0x20] ss:$16 sps:$4 sm:$0xff]   ;;  %v1449_v7 = vld [vmem:[#allocation8 + $0x28] ss:$16 sps:$4 sm:$0xff]  }
  0x49   :  { %359 = vmatpush1.bf16.msra.mxu0 %v1378_v24  ;;  %402 = vmatpush1.bf16.msra.mxu1 %v1381_v25  ;;  %v1454_v8 = vld [vmem:[#allocation8 + $0x4] ss:$16 sps:$4 sm:$0xff]   ;;  %v1457_v9 = vld [vmem:[#allocation8 + $0xc] ss:$16 sps:$4 sm:$0xff]   ;;  %v1452_v10 = vld [vmem:[#allocation8] ss:$16 sps:$4 sm:$0xff]  }
  0x4a   :  { %544 = vmatprep.subr.bf16.mxu0 %v1387_v26  ;;  %587 = vmatprep.subr.bf16.mxu1 %v1390_v27  ;;  %v1455_v11 = vld [vmem:[#allocation8 + $0x8] ss:$16 sps:$4 sm:$0xff]   ;;  %v1458_v12 = vld [vmem:[%s1942_s7] sm:$0xff]  }
  0x4c   :  { %1281 = vmatmul.mubr.msk.bf16.vlgmr.msra.gmra.mxu0 %vm340_vm1, %v1384_v28  ;;  %1282 = vmatmul.mubr.msk.bf16.vlgmr.msra.gmra.mxu1 %vm340_vm1, %v1384_v28 }
  0x4d   :  { %545 = vmatpush1.bf16.msra.mxu0 %v1385_v29  ;;  %588 = vmatpush1.bf16.msra.mxu1 %v1388_v30 }
  0x4e   :  { %546 = vmatprep.subr.bf16.mxu0 %v1393_v31  ;;  %589 = vmatprep.subr.bf16.mxu1 %v1396_v32 }
  0x4f   :  { %568 = vmatprep.mubr.bf16.mxu0 %v1577_v0  ;;  %611 = vmatprep.mubr.bf16.mxu1 %v1577_v0 }
  0x51   :  { %547 = vmatpush1.bf16.msra.mxu0 %v1391_v33  ;;  %590 = vmatpush1.bf16.msra.mxu1 %v1394_v34 }
  0x52   :  { %548 = vmatprep.subr.bf16.mxu0 %v1399_v35  ;;  %591 = vmatprep.subr.bf16.mxu1 %v1402_v36 }
  0x55   :  { %549 = vmatpush1.bf16.msra.mxu0 %v1397_v37  ;;  %592 = vmatpush1.bf16.msra.mxu1 %v1400_v38 }
  0x56   :  { %550 = vmatprep.subr.bf16.mxu0 %v1405_v39  ;;  %593 = vmatprep.subr.bf16.mxu1 %v1408_v40 }
  0x59   :  { %551 = vmatpush1.bf16.msra.mxu0 %v1403_v41  ;;  %594 = vmatpush1.bf16.msra.mxu1 %v1406_v42 }
  0x5a   :  { %822 = vmatprep.subr.bf16.mxu0 %v1412_v43  ;;  %865 = vmatprep.subr.bf16.mxu1 %v1415_v44 }
  0x5c   :  { %1300 = vmatmul.mubr.msk.bf16.vlgmr.msra.gmra.mxu0 %vm340_vm1, %v1409_v45  ;;  %1301 = vmatmul.mubr.msk.bf16.vlgmr.msra.gmra.mxu1 %vm340_vm1, %v1409_v45 }
  0x5d   :  { %823 = vmatpush1.bf16.msra.mxu0 %v1410_v46  ;;  %866 = vmatpush1.bf16.msra.mxu1 %v1413_v47 }
  0x5e   :  { %824 = vmatprep.subr.bf16.mxu0 %v1418_v48  ;;  %867 = vmatprep.subr.bf16.mxu1 %v1421_v49 }
  0x5f   :  { %854 = vmatprep.mubr.bf16.mxu0 %v1577_v0  ;;  %897 = vmatprep.mubr.bf16.mxu1 %v1577_v0  ;;  %v1442_v0 = vld [vmem:[#allocation8 + $0x44] ss:$16 sps:$4 sm:$0xff]  }
  0x61   :  { %825 = vmatpush1.bf16.msra.mxu0 %v1416_v50  ;;  %868 = vmatpush1.bf16.msra.mxu1 %v1419_v51 }
  0x62   :  { %826 = vmatprep.subr.bf16.mxu0 %v1424_v52  ;;  %869 = vmatprep.subr.bf16.mxu1 %v1427_v53 }
  0x65   :  { %827 = vmatpush1.bf16.msra.mxu0 %v1422_v54  ;;  %870 = vmatpush1.bf16.msra.mxu1 %v1425_v55 }
  0x66   :  { %828 = vmatprep.subr.bf16.mxu0 %v1430_v56  ;;  %871 = vmatprep.subr.bf16.mxu1 %v1433_v57 }
  0x69   :  { %829 = vmatpush1.bf16.msra.mxu0 %v1428_v58  ;;  %872 = vmatpush1.bf16.msra.mxu1 %v1431_v59 }
  0x6a   :  { %830 = vmatprep.subr.bf16.mxu0 %v1436_v60  ;;  %873 = vmatprep.subr.bf16.mxu1 %v1439_v61 }
  0x6d   :  { %831 = vmatpush1.bf16.msra.mxu0 %v1434_v62  ;;  %874 = vmatpush1.bf16.msra.mxu1 %v1437_v63 }
  0x6e   :  { %832 = vmatprep.subr.bf16.mxu0 %v1442_v0  ;;  %875 = vmatprep.subr.bf16.mxu1 %v1445_v1 }
  0x71   :  { %833 = vmatpush1.bf16.msra.mxu0 %v1440_v2  ;;  %876 = vmatpush1.bf16.msra.mxu1 %v1443_v3 }
  0x72   :  { %834 = vmatprep.subr.bf16.mxu0 %v1448_v4  ;;  %877 = vmatprep.subr.bf16.mxu1 %v1451_v5 }
  0x75   :  { %835 = vmatpush1.bf16.msra.mxu0 %v1446_v6  ;;  %878 = vmatpush1.bf16.msra.mxu1 %v1449_v7 }
  0x76   :  { %836 = vmatprep.subr.bf16.mxu0 %v1454_v8  ;;  %879 = vmatprep.subr.bf16.mxu1 %v1457_v9 }
  0x79   :  { %837 = vmatpush1.bf16.msra.mxu0 %v1452_v10  ;;  %880 = vmatpush1.bf16.msra.mxu1 %v1455_v11 }
  0x7c   :  { %855 = vmatmul.mubr.bf16.vlgmr.msra.gmra.mxu0 %v1458_v12  ;;  %898 = vmatmul.mubr.bf16.vlgmr.msra.gmra.mxu1 %v1458_v12 }
  0xfc   :  { %v1686_v13 = vpop.f32.mrf.mxu0  ;;  %v1688_v14 = vpop.f32.mrf.mxu1 }
  0xfe   :  { %v1690_v15 = vpop.f32.mrf.mxu0  ;;  %v1692_v16 = vpop.f32.mrf.mxu1 }
  0xff   :  { %v908_v17 = vadd.f32 %v1690_v15, %v1686_v13 }
 0x100   :  { %v1696_v18 = vpop.f32.mrf.mxu0  ;;  %v1699_v20 = vpop.f32.mrf.mxu1 }
 0x101   :  { %v909_v19 = vadd.f32 %v908_v17, %v1688_v14 }
 0x102   :  { %v1701_v21 = vpop.f32.mrf.mxu0  ;;  %v1707_v25 = vpop.f32.mrf.mxu1 }
 0x103   :  { %v913_v22 = vadd.f32 %v1701_v21, %v1696_v18  ;;  %v910_v23 = vadd.f32 %v909_v19, %v1692_v16 }
 0x105   :  { %911 = vadd.xlane.f32.xlu0 %v910_v23  ;;  %v914_v24 = vadd.f32 %v913_v22, %v1699_v20 }
 0x107   :  { %v915_v26 = vadd.f32 %v914_v24, %v1707_v25 }
 0x109   :  { %916 = vadd.xlane.f32.xlu0 %v915_v26 }
 0x10c   :  { %v1710_v27 = vpop.f32.mrf.mxu0  ;;  %v1712_v28 = vpop.f32.mrf.mxu1 }
 0x10e   :  { %v1714_v29 = vpop.f32.mrf.mxu0  ;;  %v1716_v30 = vpop.f32.mrf.mxu1 }
 0x10f   :  { %v920_v31 = vadd.f32 %v1714_v29, %v1710_v27 }
 0x110   :  { %v1720_v32 = vpop.f32.mrf.mxu0  ;;  %v1723_v34 = vpop.f32.mrf.mxu1 }
 0x111   :  { %v921_v33 = vadd.f32 %v920_v31, %v1712_v28 }
 0x112   :  { %v1725_v35 = vpop.f32.mrf.mxu0  ;;  %v1731_v39 = vpop.f32.mrf.mxu1 }
 0x113   :  { %v925_v36 = vadd.f32 %v1725_v35, %v1720_v32  ;;  %v922_v37 = vadd.f32 %v921_v33, %v1716_v30 }
 0x115   :  { %923 = vadd.xlane.f32.xlu1 %v922_v37  ;;  %v926_v38 = vadd.f32 %v925_v36, %v1723_v34 }
 0x117   :  { %v927_v40 = vadd.f32 %v926_v38, %v1731_v39 }
 0x119   :  { %928 = vadd.xlane.f32.xlu1 %v927_v40 }
 0x11c   :  { %v1734_v41 = vpop.f32.mrf.mxu0  ;;  %v1736_v42 = vpop.f32.mrf.mxu1 }
 0x11e   :  { %v1738_v43 = vpop.f32.mrf.mxu0  ;;  %v1740_v44 = vpop.f32.mrf.mxu1 }
 0x11f   :  { %v932_v45 = vadd.f32 %v1738_v43, %v1734_v41 }
 0x120   :  { %v1744_v46 = vpop.f32.mrf.mxu0  ;;  %v1747_v48 = vpop.f32.mrf.mxu1 }
 0x121   :  { %v933_v47 = vadd.f32 %v932_v45, %v1736_v42 }
 0x122   :  { %v1749_v49 = vpop.f32.mrf.mxu0  ;;  %v1755_v53 = vpop.f32.mrf.mxu1 }
 0x123   :  { %v937_v50 = vadd.f32 %v1749_v49, %v1744_v46  ;;  %v934_v51 = vadd.f32 %v933_v47, %v1740_v44 }
 0x125   :  { %935 = vadd.xlane.f32.xlu0 %v934_v51  ;;  %v938_v52 = vadd.f32 %v937_v50, %v1747_v48 }
 0x127   :  { %v939_v54 = vadd.f32 %v938_v52, %v1755_v53 }
 0x129   :  { %940 = vadd.xlane.f32.xlu1 %v939_v54 }
 0x13c   :  { %v1758_v55 = vpop.f32.mrf.mxu0  ;;  %v1760_v56 = vpop.f32.mrf.mxu1 }
 0x13e   :  { %v1762_v57 = vpop.f32.mrf.mxu0  ;;  %v1764_v58 = vpop.f32.mrf.mxu1 }
 0x13f   :  { %v944_v59 = vadd.f32 %v1762_v57, %v1758_v55 }
 0x140   :  { %v1768_v60 = vpop.f32.mrf.mxu0  ;;  %v1771_v62 = vpop.f32.mrf.mxu1 }
 0x141   :  { %v945_v61 = vadd.f32 %v944_v59, %v1760_v56 }
 0x142   :  { %v1773_v63 = vpop.f32.mrf.mxu0  ;;  %v1779_v3 = vpop.f32.mrf.mxu1 }
 0x143   :  { %v949_v0 = vadd.f32 %v1773_v63, %v1768_v60  ;;  %v946_v1 = vadd.f32 %v945_v61, %v1764_v58 }
 0x145   :  { %947 = vadd.xlane.f32.xlu0 %v946_v1  ;;  %v950_v2 = vadd.f32 %v949_v0, %v1771_v62 }
 0x147   :  { %v951_v4 = vadd.f32 %v950_v2, %v1779_v3 }
 0x149   :  { %952 = vadd.xlane.f32.xlu1 %v951_v4 }
 0x18e   :  { %v912_v5 = vpop.xlane.xlu0 %911 }
 0x192   :  { %v917_v7 = vpop.xlane.xlu0 %916 }
 0x19e   :  { %v924_v6 = vpop.xlane.xlu1 %923 }
 0x19f   :  { %v930_v10 = vadd.f32 %v924_v6, %v912_v5 }
 0x1a2   :  { %v929_v8 = vpop.xlane.xlu1 %928 }
 0x1a3   :  { %v931_v19 = vadd.f32 %v929_v8, %v917_v7 }
 0x1ae   :  { %v936_v9 = vpop.xlane.xlu0 %935 }
 0x1af   :  { %v942_v11 = vadd.f32 %v936_v9, %v930_v10 }
 0x1b2   :  { %v941_v12 = vpop.xlane.xlu1 %940 }
 0x1b3   :  { %v943_v23 = vadd.f32 %v941_v12, %v931_v19 }
 0x1ce   :  { %v948_v17 = vpop.xlane.xlu0 %947 }
 0x1cf   :  { %v954_v22 = vadd.f32 %v948_v17, %v942_v11 }
 0x1d1   :  { %v1782_v24 = vmul.f32 0.00048828125, %v954_v22 }
 0x1d2   :  { %v953_v26 = vpop.xlane.xlu1 %952 }
 0x1d3   :  { %v955_v31 = vadd.f32 %v953_v26, %v943_v23  ;;  %v958_v33 = vsub.f32 %v1686_v13, %v1782_v24  ;;  %v959_v36 = vsub.f32 %v1690_v15, %v1782_v24  ;;  %v960_v37 = vsub.f32 %v1688_v14, %v1782_v24 }
 0x1d4   :  { %v961_v38 = vsub.f32 %v1692_v16, %v1782_v24  ;;  %v986_v40 = vsub.f32 %v1710_v27, %v1782_v24  ;;  %v987_v45 = vsub.f32 %v1714_v29, %v1782_v24  ;;  %v988_v47 = vsub.f32 %v1712_v28, %v1782_v24 }
 0x1d5   :  { %v1798_v50 = vmul.f32 0.00048828125, %v955_v31  ;;  %v966_v51 = vmul.f32 %v958_v33, %v958_v33  ;;  %v967_v52 = vmul.f32 %v959_v36, %v959_v36  ;;  %v968_v54 = vmul.f32 %v960_v37, %v960_v37 }
 0x1d6   :  { %v989_v59 = vsub.f32 %v1716_v30, %v1782_v24  ;;  %v994_v61 = vmul.f32 %v986_v40, %v986_v40  ;;  %v995_v0 = vmul.f32 %v987_v45, %v987_v45  ;;  %v969_v1 = vmul.f32 %v961_v38, %v961_v38 }
 0x1d7   :  { %v974_v2 = vadd.f32 %v967_v52, %v966_v51  ;;  %v962_v4 = vsub.f32 %v1696_v18, %v1798_v50  ;;  %v963_v5 = vsub.f32 %v1701_v21, %v1798_v50  ;;  %v996_v6 = vmul.f32 %v988_v47, %v988_v47 }
 0x1d8   :  { %v1002_v7 = vadd.f32 %v995_v0, %v994_v61  ;;  %v964_v8 = vsub.f32 %v1699_v20, %v1798_v50  ;;  %v965_v9 = vsub.f32 %v1707_v25, %v1798_v50  ;;  %v1014_v17 = vsub.f32 %v1734_v41, %v1782_v24 }
 0x1d9   :  { %v975_v10 = vadd.f32 %v974_v2, %v968_v54  ;;  %v970_v11 = vmul.f32 %v962_v4, %v962_v4  ;;  %v971_v12 = vmul.f32 %v963_v5, %v963_v5  ;;  %v997_v19 = vmul.f32 %v989_v59, %v989_v59 }
 0x1da   :  { %v1003_v22 = vadd.f32 %v1002_v7, %v996_v6  ;;  %v972_v23 = vmul.f32 %v964_v8, %v964_v8  ;;  %v1015_v26 = vsub.f32 %v1738_v43, %v1782_v24  ;;  %v973_v33 = vmul.f32 %v965_v9, %v965_v9 }
 0x1db   :  { %v976_v31 = vadd.f32 %v975_v10, %v969_v1  ;;  %v979_v36 = vadd.f32 %v971_v12, %v970_v11  ;;  %v1016_v37 = vsub.f32 %v1736_v42, %v1782_v24  ;;  %v1017_v38 = vsub.f32 %v1740_v44, %v1782_v24 }
 0x1dc   :  { %v1022_v40 = vmul.f32 %v1014_v17, %v1014_v17  ;;  %v1023_v45 = vmul.f32 %v1015_v26, %v1015_v26  ;;  %v990_v47 = vsub.f32 %v1720_v32, %v1798_v50  ;;  %v1004_v51 = vadd.f32 %v1003_v22, %v997_v19 }
 0x1dd   :  { %977 = vadd.xlane.f32.xlu0 %v976_v31  ;;  %v980_v52 = vadd.f32 %v979_v36, %v972_v23  ;;  %v1024_v54 = vmul.f32 %v1016_v37, %v1016_v37  ;;  %v991_v59 = vsub.f32 %v1725_v35, %v1798_v50  ;;  %v992_v0 = vsub.f32 %v1723_v34, %v1798_v50 }
 0x1de   :  { %v1030_v61 = vadd.f32 %v1023_v45, %v1022_v40  ;;  %v993_v1 = vsub.f32 %v1731_v39, %v1798_v50  ;;  %v998_v2 = vmul.f32 %v990_v47, %v990_v47  ;;  %v1042_v6 = vsub.f32 %v1758_v55, %v1782_v24 }
 0x1df   :  { %v981_v4 = vadd.f32 %v980_v52, %v973_v33  ;;  %v999_v5 = vmul.f32 %v991_v59, %v991_v59  ;;  %v1043_v7 = vsub.f32 %v1762_v57, %v1782_v24  ;;  %v1025_v8 = vmul.f32 %v1017_v38, %v1017_v38 }
 0x1e0   :  { %v1031_v9 = vadd.f32 %v1030_v61, %v1024_v54  ;;  %v1000_v10 = vmul.f32 %v992_v0, %v992_v0  ;;  %v1044_v11 = vsub.f32 %v1760_v56, %v1782_v24  ;;  %v1001_v12 = vmul.f32 %v993_v1, %v993_v1 }
 0x1e1   :  { %1005 = vadd.xlane.f32.xlu0 %v1004_v51  ;;  %982 = vadd.xlane.f32.xlu1 %v981_v4  ;;  %v1007_v17 = vadd.f32 %v999_v5, %v998_v2  ;;  %v1050_v19 = vmul.f32 %v1042_v6, %v1042_v6  ;;  %v1045_v23 = vsub.f32 %v1764_v58, %v1782_v24 }
 0x1e2   :  { %v1032_v22 = vadd.f32 %v1031_v9, %v1025_v8  ;;  %v1051_v26 = vmul.f32 %v1043_v7, %v1043_v7  ;;  %v1018_v31 = vsub.f32 %v1744_v46, %v1798_v50  ;;  %v1052_v36 = vmul.f32 %v1044_v11, %v1044_v11 }
 0x1e3   :  { %v1008_v33 = vadd.f32 %v1007_v17, %v1000_v10  ;;  %v1019_v37 = vsub.f32 %v1749_v49, %v1798_v50  ;;  %v1020_v38 = vsub.f32 %v1747_v48, %v1798_v50  ;;  %v1021_v45 = vsub.f32 %v1755_v53, %v1798_v50 }
 0x1e4   :  { %v1058_v40 = vadd.f32 %v1051_v26, %v1050_v19  ;;  %v1026_v47 = vmul.f32 %v1018_v31, %v1018_v31  ;;  %v1046_v51 = vsub.f32 %v1768_v60, %v1798_v50  ;;  %v1047_v59 = vsub.f32 %v1773_v63, %v1798_v50 }
 0x1e5   :  { %1033 = vadd.xlane.f32.xlu0 %v1032_v22  ;;  %v1009_v52 = vadd.f32 %v1008_v33, %v1001_v12  ;;  %v1027_v54 = vmul.f32 %v1019_v37, %v1019_v37  ;;  %v1053_v61 = vmul.f32 %v1045_v23, %v1045_v23  ;;  %v1048_v1 = vsub.f32 %v1771_v62, %v1798_v50 }
 0x1e6   :  { %v1059_v0 = vadd.f32 %v1058_v40, %v1052_v36  ;;  %v1028_v2 = vmul.f32 %v1020_v38, %v1020_v38  ;;  %v1054_v5 = vmul.f32 %v1046_v51, %v1046_v51  ;;  %v1055_v6 = vmul.f32 %v1047_v59, %v1047_v59 }
 0x1e7   :  { %1010 = vadd.xlane.f32.xlu1 %v1009_v52  ;;  %v1035_v4 = vadd.f32 %v1027_v54, %v1026_v47  ;;  %v1029_v8 = vmul.f32 %v1021_v45, %v1021_v45  ;;  %v1049_v10 = vsub.f32 %v1779_v3, %v1798_v50  ;;  %v1056_v11 = vmul.f32 %v1048_v1, %v1048_v1 }
 0x1e8   :  { %v1060_v7 = vadd.f32 %v1059_v0, %v1053_v61  ;;  %v1063_v12 = vadd.f32 %v1055_v6, %v1054_v5  ;;  %v1072_v5 = vld [vmem:[%s1943_s8] sm:$0xff] }
 0x1e9   :  { %v1036_v9 = vadd.f32 %v1035_v4, %v1028_v2  ;;  %v1057_v22 = vmul.f32 %v1049_v10, %v1049_v10 }
 0x1ea   :  { %1061 = vadd.xlane.f32.xlu0 %v1060_v7  ;;  %v1064_v19 = vadd.f32 %v1063_v12, %v1056_v11  ;;  %v1080_v12 = vld [vmem:[%s1944_s9] sm:$0xff] }
 0x1eb   :  { %v1037_v17 = vadd.f32 %v1036_v9, %v1029_v8  ;;  %v1073_v8 = vld [vmem:[%s1943_s8 + $0x8] sm:$0xff]  ;;  %s1578_s8 = smov [#allocation10]  }
 0x1ec   :  { %v1065_v23 = vadd.f32 %v1064_v19, %v1057_v22  ;;  %v1081_v22 = vld [vmem:[%s1944_s9 + $0x8] sm:$0xff]  ;;  %s1239_s9 = sshll.u32 %s1578_s8, 4  ;;  %s1240_s9 = int_to_ptr.vmem [resolvable:$true] %s1239_s9 }
 0x1ed   :  { %1038 = vadd.xlane.f32.xlu1 %v1037_v17  ;;  %s1543_s23 = scalar_lea.vmem %s1240_s9, 4096  ;;  %p1548_p7 = scmp.lt.s32.totalorder %s1240_s9, %s1240_s9 }
 0x1ee   :  { %p1544_p6 = scmp.ne.s32.totalorder %s1240_s9, %s1543_s23  ;;  %p1549_p8 = scmp.lt.s32.totalorder %s1543_s23, %s1543_s23 }
 0x1f0   :  { %p1550_p9 = por %p1549_p8, %p1548_p7 }
 0x1f1   :  { %1066 = vadd.xlane.f32.xlu1 %v1065_v23 }
 0x1f2   :  { %p1551_p10 = pnand %p1550_p9, %p1544_p6 }
 0x266   :  { %v978_v26 = vpop.xlane.xlu0 %977 }
 0x26a   :  { %v1006_v31 = vpop.xlane.xlu0 %1005  ;;  %v983_v33 = vpop.xlane.xlu1 %982 }
 0x26b   :  { %v1012_v37 = vadd.f32 %v1006_v31, %v978_v26 }
 0x26e   :  { %v1034_v36 = vpop.xlane.xlu0 %1033 }
 0x26f   :  { %v1040_v40 = vadd.f32 %v1034_v36, %v1012_v37 }
 0x270   :  { %v1011_v38 = vpop.xlane.xlu1 %1010 }
 0x271   :  { %v1013_v54 = vadd.f32 %v1011_v38, %v983_v33 }
 0x273   :  { %v1062_v45 = vpop.xlane.xlu0 %1061 }
 0x274   :  { %v1068_v47 = vadd.f32 %v1062_v45, %v1040_v40 }
 0x276   :  { %v1070_v51 = vmul.f32 0.00048828125, %v1068_v47  ;;  %v1039_v52 = vpop.xlane.xlu1 %1038 }
 0x277   :  { %v1041_v61 = vadd.f32 %v1039_v52, %v1013_v54 }
 0x278   :  { %v1074_v59 = vadd.f32 1e-05, %v1070_v51 }
 0x27a   :  { %1459 = vrsqrt.f32 %v1074_v59  ;;  %v1067_v0 = vpop.xlane.xlu1 %1066 }
 0x27b   :  { %v1069_v1 = vadd.f32 %v1067_v0, %v1041_v61 }
 0x27d   :  { %v1071_v2 = vmul.f32 0.00048828125, %v1069_v1 }
 0x27f   :  { %v1075_v4 = vadd.f32 1e-05, %v1071_v2 }
 0x281   :  { %1461 = vrsqrt.f32 %v1075_v4 }
 0x287   :  { %v1460_v6 = vpop.eup %1459 }
 0x288   :  { %v1078_v7 = vmul.f32 %v1460_v6, %v1072_v5 }
 0x28a   :  { %1088 = vperm.xlu0 %1345, %v1078_v7   ;;  %v1082_v11 = vmul.f32 %v1078_v7, %v1782_v24 }
 0x28c   :  { %v1084_v17 = vsub.f32 %v1080_v12, %v1082_v11 }
 0x28e   :  { %v1462_v9 = vpop.eup %1461 }
 0x28f   :  { %v1079_v10 = vmul.f32 %v1462_v9, %v1073_v8 }
 0x291   :  { %1093 = vperm.xlu1 %1346, %v1079_v10   ;;  %v1083_v19 = vmul.f32 %v1079_v10, %v1798_v50 }
 0x293   :  { %v1085_v23 = vsub.f32 %v1081_v22, %v1083_v19 }
 0x295   :  { %1106 = vperm.xlu1 %1346, %v1084_v17  }
 0x299   :  { %1111 = vperm.xlu1 %1346, %v1085_v23  }
 0x305   :  { %v1089_v26 = vpop.permute.xlu0 %1088 }
 0x306   :  { %v1096_v31 = vmul.f32 %v1089_v26, %v1686_v13  ;;  %v1097_v24 = vmul.f32 %v1089_v26, %v1690_v15  ;;  %v1098_v33 = vmul.f32 %v1089_v26, %v1688_v14  ;;  %v1099_v36 = vmul.f32 %v1089_v26, %v1692_v16 }
 0x307   :  { %v1138_v37 = vmul.f32 %v1089_v26, %v1710_v27  ;;  %v1139_v50 = vmul.f32 %v1089_v26, %v1714_v29  ;;  %v1140_v38 = vmul.f32 %v1089_v26, %v1712_v28  ;;  %v1141_v40 = vmul.f32 %v1089_v26, %v1716_v30 }
 0x308   :  { %v1170_v45 = vmul.f32 %v1089_v26, %v1734_v41  ;;  %v1171_v47 = vmul.f32 %v1089_v26, %v1738_v43  ;;  %v1172_v13 = vmul.f32 %v1089_v26, %v1736_v42  ;;  %v1173_v15 = vmul.f32 %v1089_v26, %v1740_v44 }
 0x309   :  { %v1202_v14 = vmul.f32 %v1089_v26, %v1758_v55  ;;  %v1203_v16 = vmul.f32 %v1089_v26, %v1762_v57  ;;  %v1204_v27 = vmul.f32 %v1089_v26, %v1760_v56  ;;  %v1205_v29 = vmul.f32 %v1089_v26, %v1764_v58 }
 0x30c   :  { %v1094_v51 = vpop.permute.xlu1 %1093 }
 0x30d   :  { %v1100_v28 = vmul.f32 %v1094_v51, %v1696_v18  ;;  %v1101_v30 = vmul.f32 %v1094_v51, %v1701_v21  ;;  %v1102_v41 = vmul.f32 %v1094_v51, %v1699_v20  ;;  %v1103_v43 = vmul.f32 %v1094_v51, %v1707_v25 }
 0x30e   :  { %v1885_v42 = vmul.f32 %v1094_v51, %v1720_v32  ;;  %v1888_v44 = vmul.f32 %v1094_v51, %v1725_v35  ;;  %v1891_v55 = vmul.f32 %v1094_v51, %v1723_v34  ;;  %v1894_v56 = vmul.f32 %v1094_v51, %v1731_v39 }
 0x30f   :  { %v1897_v18 = vmul.f32 %v1094_v51, %v1744_v46  ;;  %v1900_v21 = vmul.f32 %v1094_v51, %v1749_v49  ;;  %v1903_v20 = vmul.f32 %v1094_v51, %v1747_v48  ;;  %v1906_v25 = vmul.f32 %v1094_v51, %v1755_v53 }
 0x310   :  { %v1107_v32 = vpop.permute.xlu1 %1106  ;;  %v1909_v35 = vmul.f32 %v1094_v51, %v1768_v60  ;;  %v1912_v34 = vmul.f32 %v1094_v51, %v1773_v63  ;;  %v1915_v39 = vmul.f32 %v1094_v51, %v1771_v62  ;;  %v1918_v46 = vmul.f32 %v1094_v51, %v1779_v3 }
 0x311   :  { %v1114_v49 = vadd.f32 %v1107_v32, %v1096_v31  ;;  %v1115_v57 = vadd.f32 %v1107_v32, %v1097_v24  ;;  %v1116_v48 = vadd.f32 %v1107_v32, %v1098_v33  ;;  %v1117_v58 = vadd.f32 %v1107_v32, %v1099_v36 }
 0x312   :  { %v1146_v52 = vadd.f32 %v1138_v37, %v1107_v32  ;;  %v1147_v53 = vadd.f32 %v1139_v50, %v1107_v32  ;;  %v1148_v54 = vadd.f32 %v1140_v38, %v1107_v32  ;;  %v1149_v59 = vadd.f32 %v1141_v40, %v1107_v32 }
 0x313   :  { %v1122_v61 = vmax.f32 %v1114_v49, 0.0  ;;  %v1123_v60 = vmax.f32 %v1115_v57, 0.0  ;;  %v1124_v0 = vmax.f32 %v1116_v48, 0.0  ;;  %v1125_v1 = vmax.f32 %v1117_v58, 0.0 }
 0x314   :  { %v1154_v63 = vmax.f32 %v1146_v52, 0.0  ;;  %v1155_v2 = vmax.f32 %v1147_v53, 0.0  ;;  %v1156_v4 = vmax.f32 %v1148_v54, 0.0  ;;  %v1157_v62 = vmax.f32 %v1149_v59, 0.0  ;;  %v1112_v12 = vpop.permute.xlu1 %1111 }
 0x315   :  { %1130 = vst [vmem:[#allocation10] sm:$0xff] %v1122_v61  ;;  %1131 = vst [vmem:[#allocation10 + $0x8] sm:$0xff] %v1123_v60  ;;  %v1178_v3 = vadd.f32 %v1170_v45, %v1107_v32  ;;  %v1179_v5 = vadd.f32 %v1171_v47, %v1107_v32  ;;  %v1180_v6 = vadd.f32 %v1172_v13, %v1107_v32 }
 0x316   :  { %1132 = vst [vmem:[#allocation10 + $0x10] sm:$0xff] %v1124_v0  ;;  %1133 = vst [vmem:[#allocation10 + $0x18] sm:$0xff] %v1125_v1  ;;  %v1181_v7 = vadd.f32 %v1173_v15, %v1107_v32  ;;  %v1210_v8 = vadd.f32 %v1202_v14, %v1107_v32  ;;  %v1211_v9 = vadd.f32 %v1203_v16, %v1107_v32 }
 0x317   :  { %1162 = vst [vmem:[#allocation10 + $0x20] sm:$0xff] %v1154_v63  ;;  %1163 = vst [vmem:[#allocation10 + $0x28] sm:$0xff] %v1155_v2  ;;  %v1212_v10 = vadd.f32 %v1204_v27, %v1107_v32  ;;  %v1213_v11 = vadd.f32 %v1205_v29, %v1107_v32  ;;  %v1186_v17 = vmax.f32 %v1178_v3, 0.0  ;;  %v1187_v19 = vmax.f32 %v1179_v5, 0.0 }
 0x318   :  { %1164 = vst [vmem:[#allocation10 + $0x30] sm:$0xff] %v1156_v4  ;;  %1165 = vst [vmem:[#allocation10 + $0x38] sm:$0xff] %v1157_v62  ;;  %v1188_v22 = vmax.f32 %v1180_v6, 0.0  ;;  %v1189_v23 = vmax.f32 %v1181_v7, 0.0  ;;  %v1218_v26 = vmax.f32 %v1210_v8, 0.0  ;;  %v1219_v31 = vmax.f32 %v1211_v9, 0.0 }
 0x319   :  { %v1220_v24 = vmax.f32 %v1212_v10, 0.0  ;;  %v1221_v33 = vmax.f32 %v1213_v11, 0.0  ;;  %1194 = vst [vmem:[#allocation10 + $0x40] sm:$0xff] %v1186_v17  ;;  %1195 = vst [vmem:[#allocation10 + $0x48] sm:$0xff] %v1187_v19  ;;  %v1118_v36 = vadd.f32 %v1112_v12, %v1100_v28  ;;  %v1119_v37 = vadd.f32 %v1112_v12, %v1101_v30 }
 0x31a   :  { %1196 = vst [vmem:[#allocation10 + $0x50] sm:$0xff] %v1188_v22  ;;  %1197 = vst [vmem:[#allocation10 + $0x58] sm:$0xff] %v1189_v23  ;;  %v1120_v50 = vadd.f32 %v1112_v12, %v1102_v41  ;;  %v1121_v38 = vadd.f32 %v1112_v12, %v1103_v43  ;;  %v1150_v40 = vadd.f32 %v1885_v42, %v1112_v12 }
 0x31b   :  { %1226 = vst [vmem:[#allocation10 + $0x60] sm:$0xff] %v1218_v26  ;;  %1227 = vst [vmem:[#allocation10 + $0x68] sm:$0xff] %v1219_v31  ;;  %v1151_v45 = vadd.f32 %v1888_v44, %v1112_v12  ;;  %v1152_v47 = vadd.f32 %v1891_v55, %v1112_v12  ;;  %v1153_v13 = vadd.f32 %v1894_v56, %v1112_v12  ;;  %v1126_v15 = vmax.f32 %v1118_v36, 0.0 }
 0x31c   :  { %1228 = vst [vmem:[#allocation10 + $0x70] sm:$0xff] %v1220_v24  ;;  %1229 = vst [vmem:[#allocation10 + $0x78] sm:$0xff] %v1221_v33  ;;  %v1127_v14 = vmax.f32 %v1119_v37, 0.0  ;;  %v1128_v16 = vmax.f32 %v1120_v50, 0.0  ;;  %v1129_v27 = vmax.f32 %v1121_v38, 0.0  ;;  %v1158_v29 = vmax.f32 %v1150_v40, 0.0 }
 0x31d   :  { %v1159_v51 = vmax.f32 %v1151_v45, 0.0  ;;  %v1160_v28 = vmax.f32 %v1152_v47, 0.0  ;;  %v1161_v30 = vmax.f32 %v1153_v13, 0.0  ;;  %1134 = vst [vmem:[#allocation10 + $0x80] sm:$0xff] %v1126_v15  ;;  %v1182_v41 = vadd.f32 %v1897_v18, %v1112_v12 }
 0x31e   :  { %1135 = vst [vmem:[#allocation10 + $0x88] sm:$0xff] %v1127_v14  ;;  %1136 = vst [vmem:[#allocation10 + $0x90] sm:$0xff] %v1128_v16  ;;  %v1183_v43 = vadd.f32 %v1900_v21, %v1112_v12  ;;  %v1184_v42 = vadd.f32 %v1903_v20, %v1112_v12  ;;  %v1185_v44 = vadd.f32 %v1906_v25, %v1112_v12 }
 0x31f   :  { %1137 = vst [vmem:[#allocation10 + $0x98] sm:$0xff] %v1129_v27  ;;  %1166 = vst [vmem:[#allocation10 + $0xa0] sm:$0xff] %v1158_v29  ;;  %v1214_v55 = vadd.f32 %v1909_v35, %v1112_v12  ;;  %v1215_v56 = vadd.f32 %v1912_v34, %v1112_v12  ;;  %v1216_v32 = vadd.f32 %v1915_v39, %v1112_v12  ;;  %v1190_v49 = vmax.f32 %v1182_v41, 0.0 }
 0x320   :  { %1167 = vst [vmem:[#allocation10 + $0xa8] sm:$0xff] %v1159_v51  ;;  %1168 = vst [vmem:[#allocation10 + $0xb0] sm:$0xff] %v1160_v28  ;;  %v1217_v18 = vadd.f32 %v1918_v46, %v1112_v12  ;;  %v1191_v21 = vmax.f32 %v1183_v43, 0.0  ;;  %v1192_v57 = vmax.f32 %v1184_v42, 0.0  ;;  %v1193_v20 = vmax.f32 %v1185_v44, 0.0 }
 0x321   :  { %1169 = vst [vmem:[#allocation10 + $0xb8] sm:$0xff] %v1161_v30  ;;  %v1222_v48 = vmax.f32 %v1214_v55, 0.0  ;;  %v1223_v25 = vmax.f32 %v1215_v56, 0.0  ;;  %v1224_v58 = vmax.f32 %v1216_v32, 0.0  ;;  %1198 = vst [vmem:[#allocation10 + $0xc0] sm:$0xff] %v1190_v49 }
 0x322   :  { %v1225_v52 = vmax.f32 %v1217_v18, 0.0  ;;  %1199 = vst [vmem:[#allocation10 + $0xc8] sm:$0xff] %v1191_v21  ;;  %1200 = vst [vmem:[#allocation10 + $0xd0] sm:$0xff] %v1192_v57 }
 0x323   :  { %1201 = vst [vmem:[#allocation10 + $0xd8] sm:$0xff] %v1193_v20  ;;  %1230 = vst [vmem:[#allocation10 + $0xe0] sm:$0xff] %v1222_v48 }
 0x324   :  { %1231 = vst [vmem:[#allocation10 + $0xe8] sm:$0xff] %v1223_v25  ;;  %1232 = vst [vmem:[#allocation10 + $0xf0] sm:$0xff] %v1224_v58 }
 0x325   :  { %1233 = vst [vmem:[#allocation10 + $0xf8] sm:$0xff] %v1225_v52 }
 0x326   :  { %1554 = shalt.err (!%p1551_p10)
}
 0x327   :  { %s1579_s24 = smov 2048   ;;  %s1580_s25 = smov 128  }
 0x328   :  { %1245 = dma.vmem_to_hbm [thread:$0]  %s1240_s9, 4096, %s1945_s10, [#allocation4], %s1579_s24, %s1579_s24, %s1580_s25  }
 0x329   :  { %1569 = dma.done.wait [#allocation4], 4096  }
 0x32a   :  { %1570 = vsyncadd [#allocation4], 4294963200 }
 0x32b   :  { %1249 = vsyncpa [#allocation3], 1 }
 0x32c   :  { %1250 = vsyncpa [#allocation6], 1 }
 0x32d   :  { %1251 = vsyncpa [#allocation9], 1 }
 0x32e   :  { %1252 = vsyncpa [#allocation4], 1 }

</bundles_post_ra>
